<compile_context>
chip_gen: v7x
topology: tpu7x:2x2x1
jax: 0.10.0
libtpu: 0.0.40
codegen_flags: <defaults>
</compile_context>

<pallas_src>
import jax
import jax.numpy as jnp
from jax.experimental import pallas as pl
from jax.experimental.pallas import tpu as pltpu

BN_EPS = 1e-5
N1 = 512          # linear1 out features
N2 = 800          # linear2 out features
N2_PAD = 1024     # padded to a multiple of 128 so we get 2 lane-aligned tiles
TN2 = 512         # layer-2 feature tile (grid of 2 -> megacore-friendly on v7x)


def fused_kernel(x_ref, w1_ref, b1_ref, g1_ref, bt1_ref, w2_ref, b2_ref, o_ref):
    # ---- linear1: (B, Z) @ (Z, 512), bf16 inputs, f32 accumulation on the MXU ----
    x = x_ref[...].astype(jnp.bfloat16)
    h = jnp.dot(x, w1_ref[...], preferred_element_type=jnp.float32)
    h = h + b1_ref[...]

    # ---- BatchNorm1d (training mode): per-feature stats over the full batch ----
    mean = jnp.mean(h, axis=0, keepdims=True)
    var = jnp.mean((h - mean) ** 2, axis=0, keepdims=True)
    h = (h - mean) * jax.lax.rsqrt(var + BN_EPS)
    h = h * g1_ref[...] + bt1_ref[...]

    # ---- ReLU ----
    h = jnp.maximum(h, 0.0)

    # ---- linear2 tile: (B, 512) @ (512, TN2) ----
    y = jnp.dot(h.astype(jnp.bfloat16), w2_ref[...],
                preferred_element_type=jnp.float32)
    o_ref[...] = y + b2_ref[...]


@jax.jit
def generator_w5_forward(params, x):
    B, Z = x.shape
    out = pl.pallas_call(
        fused_kernel,
        out_shape=jax.ShapeDtypeStruct((B, N2_PAD), jnp.float32),
        grid=(N2_PAD // TN2,),
        in_specs=[
            pl.BlockSpec((B, Z), lambda j: (0, 0)),      # x (full batch, full z)
            pl.BlockSpec((Z, N1), lambda j: (0, 0)),     # w1 (bf16, full)
            pl.BlockSpec((1, N1), lambda j: (0, 0)),     # b1
            pl.BlockSpec((1, N1), lambda j: (0, 0)),     # bn1 gamma
            pl.BlockSpec((1, N1), lambda j: (0, 0)),     # bn1 beta
            pl.BlockSpec((N1, TN2), lambda j: (0, j)),   # w2 feature tile (bf16)
            pl.BlockSpec((1, TN2), lambda j: (0, j)),    # b2 feature tile
        ],
        out_specs=pl.BlockSpec((B, TN2), lambda j: (0, j)),
        compiler_params=pltpu.CompilerParams(
            dimension_semantics=("parallel",),
        ),
    )(x, params["w1"], params["b1"], params["bn1_g"], params["bn1_b"],
      params["w2"], params["b2"])
    # Drop the zero pad, then x.view(-1, 1, 800)
    return out[:, :N2].reshape(-1, 1, N2)


def init_params(key, z_dim):
    k1w, k1b, k2w, k2b = jax.random.split(key, 4)
    bound1 = 1.0 / float(z_dim) ** 0.5
    w1 = jax.random.uniform(k1w, (z_dim, N1), jnp.float32, -bound1, bound1)
    b1 = jax.random.uniform(k1b, (1, N1), jnp.float32, -bound1, bound1)
    bound2 = 1.0 / float(N1) ** 0.5
    w2 = jax.random.uniform(k2w, (N1, N2), jnp.float32, -bound2, bound2)
    b2 = jax.random.uniform(k2b, (1, N2), jnp.float32, -bound2, bound2)
    # Zero-pad layer 2 to N2_PAD output features (padding columns produce exact zeros
    # and are sliced off after the kernel).
    w2p = jnp.zeros((N1, N2_PAD), jnp.float32).at[:, :N2].set(w2)
    b2p = jnp.zeros((1, N2_PAD), jnp.float32).at[:, :N2].set(b2)
    return {
        "w1": w1.astype(jnp.bfloat16),      # weights stored/streamed in bf16
        "b1": b1,
        "bn1_g": jnp.ones((1, N1), jnp.float32),
        "bn1_b": jnp.zeros((1, N1), jnp.float32),
        "w2": w2p.astype(jnp.bfloat16),
        "b2": b2p,
    }


def generator_w5_reference(params, x):
    """Pure-JAX reference (same bf16 rounding of matmul inputs, f32 accumulation)."""
    def bf16_round(a):
        return a.astype(jnp.bfloat16).astype(jnp.float32)

    w1 = params["w1"].astype(jnp.float32)
    w2 = params["w2"].astype(jnp.float32)
    h = jnp.dot(bf16_round(x), w1, preferred_element_type=jnp.float32) + params["b1"]
    mean = jnp.mean(h, axis=0, keepdims=True)
    var = jnp.mean((h - mean) ** 2, axis=0, keepdims=True)
    h = (h - mean) / jnp.sqrt(var + BN_EPS)
    h = h * params["bn1_g"] + params["bn1_b"]
    h = jnp.maximum(h, 0.0)
    y = jnp.dot(bf16_round(h), w2, preferred_element_type=jnp.float32) + params["b2"]
    return y[:, :N2].reshape(-1, 1, N2)


if __name__ == "__main__":
    Z_DIM = 32   # args.z
    BATCH = 8

    key = jax.random.PRNGKey(0)
    key, kx = jax.random.split(key)
    params = init_params(key, Z_DIM)
    x = jax.random.normal(kx, (BATCH, Z_DIM), jnp.float32)

    out = jax.block_until_ready(generator_w5_forward(params, x))
    assert out.shape == (BATCH, 1, N2), out.shape

    ref = generator_w5_reference(params, x)
    max_err = float(jnp.max(jnp.abs(out - ref)))
    assert jnp.allclose(out, ref, atol=5e-3, rtol=5e-3), max_err

    print("KERNEL_OK")
</pallas_src>

<mosaic_0001>
module attributes {stable_mosaic.version = 11 : i64} {
  func.func @fused_kernel(%arg0: i32, %arg1: memref<8x32xf32, #tpu.memory_space<vmem>>, %arg2: memref<32x512xbf16, #tpu.memory_space<vmem>>, %arg3: memref<1x512xf32, #tpu.memory_space<vmem>>, %arg4: memref<1x512xf32, #tpu.memory_space<vmem>>, %arg5: memref<1x512xf32, #tpu.memory_space<vmem>>, %arg6: memref<512x512xbf16, #tpu.memory_space<vmem>>, %arg7: memref<1x512xf32, #tpu.memory_space<vmem>>, %arg8: memref<8x512xf32, #tpu.memory_space<vmem>>) attributes {dimension_semantics = [#tpu.dimension_semantics<parallel>], iteration_bounds = array<i64: 2>, scalar_prefetch = 0 : i64, scratch_operands = 0 : i64, tpu.core_type = #tpu.core_type<tc>, window_params = [{pipeline_mode = #tpu.pipeline_mode<synchronous>, transform_indices = @transform_0, window_bounds = array<i64: 8, 32>}, {pipeline_mode = #tpu.pipeline_mode<synchronous>, transform_indices = @transform_1, window_bounds = array<i64: 32, 512>}, {pipeline_mode = #tpu.pipeline_mode<synchronous>, transform_indices = @transform_2, window_bounds = array<i64: 1, 512>}, {pipeline_mode = #tpu.pipeline_mode<synchronous>, transform_indices = @transform_3, window_bounds = array<i64: 1, 512>}, {pipeline_mode = #tpu.pipeline_mode<synchronous>, transform_indices = @transform_4, window_bounds = array<i64: 1, 512>}, {transform_indices = @transform_5, window_bounds = array<i64: 512, 512>}, {transform_indices = @transform_6, window_bounds = array<i64: 1, 512>}, {transform_indices = @transform_7, window_bounds = array<i64: 8, 512>}]} {
    %c0 = arith.constant 0 : index
    %c0_0 = arith.constant 0 : index
    %0 = vector.load %arg1[%c0, %c0_0] : memref<8x32xf32, #tpu.memory_space<vmem>>, vector<8x32xf32>
    %1 = arith.truncf %0 : vector<8x32xf32> to vector<8x32xbf16>
    %c0_1 = arith.constant 0 : index
    %c0_2 = arith.constant 0 : index
    %2 = vector.load %arg2[%c0_1, %c0_2] : memref<32x512xbf16, #tpu.memory_space<vmem>>, vector<32x512xbf16>
    %cst = arith.constant dense<0.000000e+00> : vector<8x512xf32>
    %3 = tpu.matmul %1, %2, %cst {dimension_numbers = #tpu.dot_dimension_numbers<[1], [0], [0], [1], [0, 0, 1, 1], [], []>} : vector<8x32xbf16>, vector<32x512xbf16>, vector<8x512xf32> -> vector<8x512xf32>
    %c0_3 = arith.constant 0 : index
    %c0_4 = arith.constant 0 : index
    %4 = vector.load %arg3[%c0_3, %c0_4] : memref<1x512xf32, #tpu.memory_space<vmem>>, vector<1x512xf32>
    %5 = vector.broadcast %4 : vector<1x512xf32> to vector<8x512xf32>
    %6 = arith.addf %3, %5 : vector<8x512xf32>
    %cst_5 = arith.constant dense<0.000000e+00> : vector<512xf32>
    %7 = vector.multi_reduction <add>, %6, %cst_5 [0] : vector<8x512xf32> to vector<512xf32>
    %8 = vector.shape_cast %7 : vector<512xf32> to vector<1x512xf32>
    %cst_6 = arith.constant 8.000000e+00 : f32
    %9 = vector.broadcast %cst_6 : f32 to vector<1x512xf32>
    %10 = arith.divf %8, %9 : vector<1x512xf32>
    %11 = vector.broadcast %10 : vector<1x512xf32> to vector<8x512xf32>
    %12 = arith.subf %6, %11 : vector<8x512xf32>
    %13 = arith.mulf %12, %12 : vector<8x512xf32>
    %cst_7 = arith.constant dense<0.000000e+00> : vector<512xf32>
    %14 = vector.multi_reduction <add>, %13, %cst_7 [0] : vector<8x512xf32> to vector<512xf32>
    %15 = vector.shape_cast %14 : vector<512xf32> to vector<1x512xf32>
    %cst_8 = arith.constant 8.000000e+00 : f32
    %16 = vector.broadcast %cst_8 : f32 to vector<1x512xf32>
    %17 = arith.divf %15, %16 : vector<1x512xf32>
    %18 = vector.broadcast %10 : vector<1x512xf32> to vector<8x512xf32>
    %19 = arith.subf %6, %18 : vector<8x512xf32>
    %cst_9 = arith.constant 9.99999974E-6 : f32
    %20 = vector.broadcast %cst_9 : f32 to vector<1x512xf32>
    %21 = arith.addf %17, %20 : vector<1x512xf32>
    %22 = math.rsqrt %21 : vector<1x512xf32>
    %23 = vector.broadcast %22 : vector<1x512xf32> to vector<8x512xf32>
    %24 = arith.mulf %19, %23 : vector<8x512xf32>
    %c0_10 = arith.constant 0 : index
    %c0_11 = arith.constant 0 : index
    %25 = vector.load %arg4[%c0_10, %c0_11] : memref<1x512xf32, #tpu.memory_space<vmem>>, vector<1x512xf32>
    %26 = vector.broadcast %25 : vector<1x512xf32> to vector<8x512xf32>
    %27 = arith.mulf %24, %26 : vector<8x512xf32>
    %c0_12 = arith.constant 0 : index
    %c0_13 = arith.constant 0 : index
    %28 = vector.load %arg5[%c0_12, %c0_13] : memref<1x512xf32, #tpu.memory_space<vmem>>, vector<1x512xf32>
    %29 = vector.broadcast %28 : vector<1x512xf32> to vector<8x512xf32>
    %30 = arith.addf %27, %29 : vector<8x512xf32>
    %cst_14 = arith.constant 0.000000e+00 : f32
    %31 = vector.broadcast %cst_14 : f32 to vector<8x512xf32>
    %32 = arith.maximumf %30, %31 : vector<8x512xf32>
    %33 = arith.truncf %32 : vector<8x512xf32> to vector<8x512xbf16>
    %c0_15 = arith.constant 0 : index
    %c0_16 = arith.constant 0 : index
    %34 = vector.load %arg6[%c0_15, %c0_16] : memref<512x512xbf16, #tpu.memory_space<vmem>>, vector<512x512xbf16>
    %cst_17 = arith.constant dense<0.000000e+00> : vector<8x512xf32>
    %35 = tpu.matmul %33, %34, %cst_17 {dimension_numbers = #tpu.dot_dimension_numbers<[1], [0], [0], [1], [0, 0, 1, 1], [], []>} : vector<8x512xbf16>, vector<512x512xbf16>, vector<8x512xf32> -> vector<8x512xf32>
    %c0_18 = arith.constant 0 : index
    %c0_19 = arith.constant 0 : index
    %36 = vector.load %arg7[%c0_18, %c0_19] : memref<1x512xf32, #tpu.memory_space<vmem>>, vector<1x512xf32>
    %37 = vector.broadcast %36 : vector<1x512xf32> to vector<8x512xf32>
    %38 = arith.addf %35, %37 : vector<8x512xf32>
    %c0_20 = arith.constant 0 : index
    %c0_21 = arith.constant 0 : index
    %39 = vector.load %arg8[%c0_20, %c0_21] : memref<8x512xf32, #tpu.memory_space<vmem>>, vector<8x512xf32>
    tpu.vector_store %arg8[%c0_20, %c0_21], %38 {strides = array<i32>} : memref<8x512xf32, #tpu.memory_space<vmem>>, vector<8x512xf32>,
    return
  }
  func.func @transform_0(%arg0: i32) -> (i32, i32) {
    %c0_i32 = arith.constant 0 : i32
    %c0_i32_0 = arith.constant 0 : i32
    %c0_i32_1 = arith.constant 0 : i32
    return %c0_i32, %c0_i32_0 : i32, i32
  }
  func.func @transform_1(%arg0: i32) -> (i32, i32) {
    %c0_i32 = arith.constant 0 : i32
    %c0_i32_0 = arith.constant 0 : i32
    %c0_i32_1 = arith.constant 0 : i32
    return %c0_i32, %c0_i32_0 : i32, i32
  }
  func.func @transform_2(%arg0: i32) -> (i32, i32) {
    %c0_i32 = arith.constant 0 : i32
    %c0_i32_0 = arith.constant 0 : i32
    %c0_i32_1 = arith.constant 0 : i32
    return %c0_i32, %c0_i32_0 : i32, i32
  }
  func.func @transform_3(%arg0: i32) -> (i32, i32) {
    %c0_i32 = arith.constant 0 : i32
    %c0_i32_0 = arith.constant 0 : i32
    %c0_i32_1 = arith.constant 0 : i32
    return %c0_i32, %c0_i32_0 : i32, i32
  }
  func.func @transform_4(%arg0: i32) -> (i32, i32) {
    %c0_i32 = arith.constant 0 : i32
    %c0_i32_0 = arith.constant 0 : i32
    %c0_i32_1 = arith.constant 0 : i32
    return %c0_i32, %c0_i32_0 : i32, i32
  }
  func.func @transform_5(%arg0: i32) -> (i32, i32) {
    %c0_i32 = arith.constant 0 : i32
    %c0_i32_0 = arith.constant 0 : i32
    return %c0_i32, %arg0 : i32, i32
  }
  func.func @transform_6(%arg0: i32) -> (i32, i32) {
    %c0_i32 = arith.constant 0 : i32
    %c0_i32_0 = arith.constant 0 : i32
    return %c0_i32, %arg0 : i32, i32
  }
  func.func @transform_7(%arg0: i32) -> (i32, i32) {
    %c0_i32 = arith.constant 0 : i32
    %c0_i32_0 = arith.constant 0 : i32
    return %c0_i32, %arg0 : i32, i32
  }
}

</mosaic_0001>

<bundles_post_ra>
// kernel: generator_w5_forward.1
= control target key start
LH: loop header
LB: loop body
LE: loop exit
PB: predicated region body
PF: predicated region fallthrough
CT: control target
= control target key end

     0   :  { %s2840_s0 = inlined_call_operand.vmem [shape: f32[8,32], index: 0, kind: input, shape index: {}]   ;;  %s2841_s1 = inlined_call_operand.hbm [shape: bf16[32,512], index: 1, kind: input, shape index: {}]   ;;  %s2842_s2 = inlined_call_operand.hbm [shape: f32[1,512], index: 2, kind: input, shape index: {}]   ;;  %s2843_s3 = inlined_call_operand.vmem [shape: f32[1,512], index: 3, kind: input, shape index: {}]   ;;  %s2844_s4 = inlined_call_operand.hbm [shape: f32[1,512], index: 4, kind: input, shape index: {}]   ;;  %s2845_s5 = inlined_call_operand.hbm [shape: bf16[512,1024], index: 5, kind: input, shape index: {}]   ;;  %s2846_s6 = inlined_call_operand.hbm [shape: f32[1,1024], index: 6, kind: input, shape index: {}]   ;;  %s2847_s7 = inlined_call_operand.vmem [shape: f32[8,1024], index: 7, kind: output, shape index: {}]  }
   0x1   :  { %2859 = sst [smem:[#allocation15_spill]] %s2842_s2 }
   0x2   :  { %2860 = sst [smem:[#allocation16_spill]] %s2845_s5 }
   0x3   :  { %2861 = sst [smem:[#allocation17_spill]] %s2847_s7 }
   0x4   :  { %12 = vsyncpa [#allocation3], 0 }
   0x5   :  { %13 = vsyncpa [#allocation5], 0 }
   0x6   :  { %14 = vsyncpa [#allocation8], 0 }
   0x7   :  { %16 = vsyncpa [#allocation8 + $0x1], 0  ;;  %s2452_s24 = smov 0   ;;  %s2454_s25 = smov 0  }
   0x8   :  { %s2456_s26 = smov 0   ;;  %s2458_s27 = smov 0  }
   0x9 LB: > { %s2471_s28 = sadd.s32 4294967295, %s2401_s27   ;;  %s2474_s29 = sadd.s32 1, %s2401_s27   ;;  %s2401_s27 = sphi %s2458_s27, %s2884_s27   ;;  %s2397_s26 = sphi %s2456_s26, %s2888_s26   ;;  %s2393_s25 = sphi %s2454_s25, %s2887_s25   ;;  %s2389_s24 = sphi %s2452_s24, %s2886_s24  }
   0xa   : > { %2862 = sst [smem:[#allocation13_spill]] %s2474_s29  ;;  %s131_s30 = ssub.s32 %s2401_s27, %s2474_s29 }
   0xb   : > { %s134_s8 = sadd.s32 1, %s2397_s26  ;;  %p132_p0 = scmp.eq.s32.totalorder %s131_s30, 0 }
   0xc   : > { %p141_p1 = scmp.ne.s32.totalorder %s2397_s26, %s2393_s25  ;;  %p142_p2 = scmp.eq.s32.totalorder %s2401_s27, 0 }
   0xd   : > { %p147_p3 = scmp.ne.s32.totalorder %s2393_s25, %s2389_s24  ;;  %p2848_p5 = scmp.eq.s32.totalorder %s2471_s28, 0 }
   0xe   : > { %s2484_s9 = scalar_select %p132_p0, %s2397_s26, %s134_s8  }
   0xf   : > { %p143_p4 = por %p142_p2, %p141_p1  ;;  %p1751_p6 = scmp.ge.s32.totalorder %s2401_s27, 1 }
  0x10   : > { %2863 = sst [smem:[#allocation14_spill]] %s2484_s9  ;;  %p210_p7 = scmp.lt.s32.totalorder %s2401_s27, 3 }
  0x11   : > { %p2491_p8 = por %p2848_p5, %p147_p3  ;;  %s2403_s12 = smov [#allocation4]  }
  0x12   : > { %p2495_p9 = pnand %p1751_p6, %p210_p7  ;;  %s239_s13 = sshll.u32 %s2403_s12, 4  ;;  %s240_s13 = int_to_ptr.vmem [resolvable:$true] %s239_s13 }
  0x13   : > { %s2864_s10 = scalar_select %p2491_p8, 1, 0 }
  0x14   : > { %s2865_s11 = scalar_select %p2495_p9, 1, 0 }
  0x15   : > { %p1940_p10 = pneg %p2495_p9  ;;  %p1960_p11 = scmp.lt.s32.totalorder %s2401_s27, 2 }
  0x16   : > { %s264_s16 = sand.u32 1, %s2401_s27   ;;  %s2868_s2 = sld [smem:[#allocation15_spill]] }
  0x17   : > { %p2504_p12 = pnand %p1940_p10, %p2848_p5  ;;  %p2508_p13 = pnand %p1960_p11, %p143_p4 }
  0x19   : > { %s2866_s14 = scalar_select %p2504_p12, 1, 0 }
  0x1a   : > { %s2867_s15 = scalar_select %p2508_p13, 1, 0 }
  0x1b   : > { %p2521_p1 = pneg %p2504_p12 }
  0x1c   : > { %s2215_s19 = scalar_lea.hbm %s2868_s2, 64 }
  0x1d   : > { %p2216_p0 = scmp.ne.s32.totalorder %s2868_s2, %s2215_s19  ;;  %p2222_p4 = scmp.lt.u32.totalorder %s2215_s19, %s2868_s2 }
  0x1f   : > { %p2218_p2 = pnand %p2521_p1, %p2216_p0 }
  0x21   : > { %p2219_p3 = pneg %p2218_p2 }
  0x23   : > { %p2224_p6 = pnand %p2222_p4, %p2219_p3 }
  0x25   : > { %2227 = shalt.err (!%p2224_p6)
}
  0x26   : > { %s2228_s30 = scalar_lea.vmem %s240_s13, 64  ;;  %p2236_p5 = scmp.lt.s32.totalorder %s240_s13, %s240_s13 }
  0x27   : > { %p2229_p7 = scmp.ne.s32.totalorder %s240_s13, %s2228_s30  ;;  %p2237_p8 = scmp.lt.s32.totalorder %s2228_s30, %s2228_s30 }
  0x29   : > { %p2231_p10 = pnand %p2229_p7, %p2521_p1  ;;  %p2238_p9 = por %p2237_p8, %p2236_p5 }
  0x2b   : > { %p2232_p11 = pneg %p2231_p10 }
  0x2d   : > { %p2239_p13 = pnand %p2238_p9, %p2232_p11 }
  0x2f   : > { %2242 = shalt.err (!%p2239_p13)
}
  0x30   : > { %1946 = dma.hbm_to_vmem [thread:$0]  (!%p2504_p12), %s2868_s2, 64, %s240_s13, [#allocation5]  }
  0x31   : > { %s2852_s17 = sand.u32 1, %s2397_s26   ;;  %s1910_s19 = sshll.u32 %s2401_s27, 8 }
  0x32   : > { %s1756_s18 = sshll.u32 %s2852_s17, 10  ;;  %s2870_s5 = sld [smem:[#allocation16_spill]] }
  0x33   : > { %s268_s24 = scalar_lea.vmem [#allocation7], %s1756_s18  ;;  %s2548_s8 = scalar_lea.sflag [#allocation8], %s264_s16 }
  0x34   : > { %s275_s30 = sshll.u32 %s268_s24, 4  ;;  %p2871_p8 = scmp.ne.s32.totalorder %s2867_s15, 0  ;;  %s2546_s30 = int_to_ptr.vmem [resolvable:$true] %s275_s30 }
  0x36   : > { %p2857_p9 = pneg %p2871_p8 }
  0x38   : > { %s2544_s23 = scalar_lea.hbm %s2870_s5, %s1910_s19  ;;  %s2248_s20 = scalar_lea.hbm %s2870_s5, 32768 }
  0x39   : > { %s2243_s13 = scalar_lea.hbm %s2544_s23, 16384  ;;  %p2249_p2 = scmp.lt.u32.totalorder %s2544_s23, %s2870_s5 }
  0x3a   : > { %p2244_p5 = scmp.ne.s32.totalorder %s2544_s23, %s2243_s13  ;;  %p2250_p3 = scmp.lt.u32.totalorder %s2248_s20, %s2243_s13 }
  0x3b   : > { %p2252_p6 = scmp.lt.u32.totalorder %s2243_s13, %s2544_s23 }
  0x3c   : > { %p2246_p13 = pnand %p2857_p9, %p2244_p5  ;;  %p2251_p4 = por %p2250_p3, %p2249_p2 }
  0x3e   : > { %p2247_p0 = pneg %p2246_p13  ;;  %p2253_p7 = por %p2252_p6, %p2251_p4 }
  0x40   : > { %p2254_p10 = pnand %p2253_p7, %p2247_p0 }
  0x42   : > { %2257 = shalt.err (!%p2254_p10)
}
  0x43   : > { %s2258_s16 = scalar_lea.vmem %s2546_s30, 16384  ;;  %s2404_s18 = smov [#allocation7]  }
  0x44   : > { %p2259_p11 = scmp.ne.s32.totalorder %s2546_s30, %s2258_s16  ;;  %s2263_s24 = sshll.u32 %s2404_s18, 4  ;;  %s2264_s24 = int_to_ptr.vmem [resolvable:$false] %s2263_s24 }
  0x45   : > { %s2265_s17 = scalar_lea.vmem %s2264_s24, 32768  ;;  %p2266_p12 = scmp.lt.s32.totalorder %s2546_s30, %s2264_s24 }
  0x46   : > { %p2261_p5 = pnand %p2259_p11, %p2857_p9  ;;  %p2267_p2 = scmp.lt.s32.totalorder %s2265_s17, %s2258_s16 }
  0x48   : > { %p2262_p13 = pneg %p2261_p5  ;;  %p2268_p3 = por %p2267_p2, %p2266_p12 }
  0x4a   : > { %p2269_p4 = pnand %p2268_p3, %p2262_p13 }
  0x4c   : > { %2272 = shalt.err (!%p2269_p4)
}
  0x4d   : > { %s2405_s13 = smov 512   ;;  %s2406_s12 = smov 256  }
  0x4e   : > { %s2407_s19 = smov 16   ;;  %s2408_s20 = smov [#allocation2]  }
  0x4f   : > { %1953 = dma.hbm_to_vmem [thread:$0]  (!%p2871_p8), %s2544_s23, 16384, %s2546_s30, %s2548_s8, %s2405_s13, %s2406_s12, %s2407_s19  }
  0x50   : > { %s225_s21 = sshll.u32 %s2408_s20, 4  ;;  %s2409_s18 = smov [#allocation6]   ;;  %s226_s21 = int_to_ptr.vmem [resolvable:$true] %s225_s21 }
  0x51   : > { %s253_s2 = sshll.u32 %s2409_s18, 4  ;;  %s2273_s17 = scalar_lea.hbm %s2841_s1, 1024  ;;  %s254_s2 = int_to_ptr.vmem [resolvable:$true] %s253_s2 }
  0x52   : > { %p2274_p12 = scmp.ne.s32.totalorder %s2841_s1, %s2273_s17  ;;  %p2280_p7 = scmp.lt.u32.totalorder %s2273_s17, %s2841_s1 }
  0x54   : > { %p2276_p0 = pnand %p2274_p12, %p2521_p1 }
  0x56   : > { %p2277_p6 = pneg %p2276_p0 }
  0x58   : > { %p2282_p10 = pnand %p2280_p7, %p2277_p6 }
  0x5a   : > { %2285 = shalt.err (!%p2282_p10)
}
  0x5b   : > { %s2286_s23 = scalar_lea.vmem %s226_s21, 1024  ;;  %p2294_p2 = scmp.lt.s32.totalorder %s226_s21, %s226_s21 }
  0x5c   : > { %p2287_p11 = scmp.ne.s32.totalorder %s226_s21, %s2286_s23  ;;  %p2295_p3 = scmp.lt.s32.totalorder %s2286_s23, %s2286_s23 }
  0x5e   : > { %p2289_p5 = pnand %p2287_p11, %p2521_p1  ;;  %p2296_p4 = por %p2295_p3, %p2294_p2 }
  0x60   : > { %p2290_p13 = pneg %p2289_p5 }
  0x62   : > { %p2297_p9 = pnand %p2296_p4, %p2290_p13 }
  0x64   : > { %2300 = shalt.err (!%p2297_p9)
}
  0x65   : > { %p2872_p12 = scmp.ne.s32.totalorder %s2866_s14, 0  ;;  %s2873_s7 = sand.u32 1, %s2397_s26  }
  0x66   : > { %s1759_s29 = sshll.u32 %s2873_s7, 2  ;;  %s2301_s20 = scalar_lea.hbm %s2844_s4, 64 }
  0x67   : > { %1943 = dma.hbm_to_vmem [thread:$0]  (!%p2872_p12), %s2841_s1, 1024, %s226_s21, [#allocation3], %s2406_s12, %s2406_s12, %s2407_s19  }
  0x68   : > { %p2302_p0 = scmp.ne.s32.totalorder %s2844_s4, %s2301_s20  ;;  %p2308_p7 = scmp.lt.u32.totalorder %s2301_s20, %s2844_s4 }
  0x6a   : > { %p2304_p9 = pnand %p2302_p0, %p2521_p1 }
  0x6c   : > { %p2305_p6 = pneg %p2304_p9 }
  0x6e   : > { %p2310_p10 = pnand %p2308_p7, %p2305_p6 }
  0x70   : > { %2313 = shalt.err (!%p2310_p10)
}
  0x71   : > { %s2314_s12 = scalar_lea.vmem %s254_s2, 64  ;;  %p2322_p2 = scmp.lt.s32.totalorder %s254_s2, %s254_s2 }
  0x72   : > { %p2315_p11 = scmp.ne.s32.totalorder %s254_s2, %s2314_s12  ;;  %p2323_p3 = scmp.lt.s32.totalorder %s2314_s12, %s2314_s12 }
  0x74   : > { %p2317_p5 = pnand %p2315_p11, %p2521_p1  ;;  %p2324_p4 = por %p2323_p3, %p2322_p2 }
  0x76   : > { %p2318_p13 = pneg %p2317_p5 }
  0x78   : > { %p2325_p8 = pnand %p2324_p4, %p2318_p13 }
  0x7a   : > { %2328 = shalt.err (!%p2325_p8)
}
  0x7b   : > { %1949 = dma.hbm_to_vmem [thread:$0]  (!%p2872_p12), %s2844_s4, 64, %s254_s2, [#allocation5]  }
  0x7c   : > { %s1911_s23 = sshll.u32 %s2401_s27, 6  ;;  %s289_s7 = scalar_lea.vmem [#allocation9], %s1759_s29 }
  0x7d   : > { %s2618_s22 = scalar_lea.hbm %s2846_s6, %s1911_s23  ;;  %s297_s30 = sshll.u32 %s289_s7, 4  ;;  %s298_s30 = int_to_ptr.vmem [resolvable:$true] %s297_s30 }
  0x7e   : > { %s2329_s14 = scalar_lea.hbm %s2618_s22, 64  ;;  %p2874_p8 = scmp.ne.s32.totalorder %s2867_s15, 0 }
  0x7f   : > { %p2330_p1 = scmp.ne.s32.totalorder %s2618_s22, %s2329_s14  ;;  %s2334_s13 = scalar_lea.hbm %s2846_s6, 128 }
  0x80   : > { %p2875_p0 = pneg %p2874_p8  ;;  %p2335_p12 = scmp.lt.u32.totalorder %s2618_s22, %s2846_s6 }
  0x81   : > { %p2336_p7 = scmp.lt.u32.totalorder %s2334_s13, %s2329_s14  ;;  %p2338_p11 = scmp.lt.u32.totalorder %s2329_s14, %s2618_s22 }
  0x82   : > { %p2332_p9 = pnand %p2330_p1, %p2875_p0 }
  0x83   : > { %p2337_p10 = por %p2336_p7, %p2335_p12 }
  0x84   : > { %p2333_p6 = pneg %p2332_p9 }
  0x85   : > { %p2339_p5 = por %p2338_p11, %p2337_p10 }
  0x87   : > { %p2340_p13 = pnand %p2339_p5, %p2333_p6 }
  0x89   : > { %2343 = shalt.err (!%p2340_p13)
}
  0x8a   : > { %s2344_s29 = scalar_lea.vmem %s298_s30, 64  ;;  %p2876_p3 = pmov %p2875_p0 }
  0x8b   : > { %p2345_p2 = scmp.ne.s32.totalorder %s298_s30, %s2344_s29  ;;  %s2410_s24 = smov [#allocation9]  }
  0x8c   : > { %s2349_s16 = sshll.u32 %s2410_s24, 4  ;;  %s2350_s16 = int_to_ptr.vmem [resolvable:$false] %s2349_s16 }
  0x8d   : > { %p2347_p4 = pnand %p2345_p2, %p2876_p3  ;;  %s2351_s17 = scalar_lea.vmem %s2350_s16, 128 }
  0x8e   : > { %p2352_p0 = scmp.lt.s32.totalorder %s298_s30, %s2350_s16  ;;  %p2353_p9 = scmp.lt.s32.totalorder %s2351_s17, %s2344_s29 }
  0x8f   : > { %p2348_p1 = pneg %p2347_p4 }
  0x90   : > { %p2354_p7 = por %p2353_p9, %p2352_p0 }
  0x92   : > { %p2355_p12 = pnand %p2354_p7, %p2348_p1 }
  0x94   : > { %2358 = shalt.err (!%p2355_p12)
}
  0x95   : > { %1956 = dma.hbm_to_vmem [thread:$0]  (!%p2874_p8), %s2618_s22, 64, %s298_s30, %s2548_s8  }
  0x96   : > { %p2877_p6 = scmp.ne.s32.totalorder %s2865_s11, 0 }
  0x97   : > { %p2878_p10 = scmp.eq.s32.totalorder (!%p2877_p6), %s2471_s28, 0 }
  0x98   : > { %306 = sbr.rel (%p2877_p6) target bundleno = 729 (0x2d9), region = 48 }
  0x9f   : > { %2376 = dma.done.wait (%p2878_p10), [#allocation3], 1024   ;;  %p2879_p11 = pmov %p2878_p10 }
  0xa0   : > { %p2880_p5 = pmov %p2878_p10 }
  0xa1   : > { %2378 = vsyncadd (%p2879_p11), [#allocation3], 4294966272 }
  0xa2   : > { %2380 = dma.done.wait (%p2880_p5), [#allocation5], 128   ;;  %p2881_p13 = pmov %p2880_p5 }
  0xa3   : > { %s320_s15 = sand.u32 1, %s2471_s28   ;;  %s322_s8 = sand.u32 1, %s2393_s25  }
  0xa4   : > { %2382 = vsyncadd (%p2881_p13), [#allocation5], 4294967168  ;;  %s1766_s11 = sshll.u32 %s322_s8, 10  ;;  %s321_s12 = scalar_lea.sflag [#allocation8], %s320_s15 }
  0xa5   : > { %s2654_s19 = scalar_lea.vmem [#allocation7], %s1766_s11  ;;  %p2882_p8 = scmp.ne.s32.totalorder %s2864_s10, 0 }
  0xa7   : > { %2384 = dma.done.wait (%p2882_p8), %s321_s12, 16448  }
  0xa8   : > { %2386 = vsyncadd (%p2882_p8), %s321_s12, 4294950848  ;;  %v2411_v0 = vmov 0   ;;  %v2003_v1 = vld [vmem:[#allocation2 + $0x4] ss:$16 sps:$4 sm:$0xff]   ;;  %v2005_v2 = vld [vmem:[#allocation2] ss:$16 sps:$4 sm:$0xff]  }
  0xa9   : > { %486 = vmatprep.mubr.bf16.mxu0 %v2411_v0  ;;  %527 = vmatprep.mubr.bf16.mxu1 %v2411_v0  ;;  %v2006_v3 = vld [vmem:[#allocation2 + $0x24] ss:$16 sps:$4 sm:$0xff]   ;;  %v2008_v4 = vld [vmem:[#allocation2 + $0x20] ss:$16 sps:$4 sm:$0xff]   ;;  %v378_v5 = vld [vmem:[%s2840_s0] sm:$0xff]  ;;  %vm450_vm0 = vcmask 261120  }
  0xaa   : > { %454 = vmatprep.subr.bf16.mxu0 %v2003_v1  ;;  %v2009_v6 = vld [vmem:[#allocation2 + $0xc] ss:$16 sps:$4 sm:$0xff]   ;;  %v2011_v7 = vld [vmem:[#allocation2 + $0x8] ss:$16 sps:$4 sm:$0xff]   ;;  %v379_v9 = vpack.c.bf16 %v378_v5, %v378_v5  ;;  %v2020_v13 = vld [vmem:[%s2654_s19 + $0xc] ss:$16 sps:$4 sm:$0xff]  }
  0xab   : > { %455 = vmatpush1.bf16.msra.mxu0 %v2005_v2  ;;  %495 = vmatprep.subr.bf16.mxu1 %v2009_v6  ;;  %v2012_v8 = vld [vmem:[#allocation2 + $0x2c] ss:$16 sps:$4 sm:$0xff]   ;;  %v2014_v10 = vld [vmem:[#allocation2 + $0x28] ss:$16 sps:$4 sm:$0xff]   ;;  %v2018_v15 = vld [vmem:[%s2654_s19 + $0x8] ss:$16 sps:$4 sm:$0xff]  }
  0xac   : > { %456 = vmatprep.subr.bf16.mxu0 %v2006_v3  ;;  %496 = vmatpush1.bf16.msra.mxu1 %v2011_v7  ;;  %v2017_v11 = vld [vmem:[%s2654_s19 + $0x4] ss:$16 sps:$4 sm:$0xff]   ;;  %v2015_v12 = vld [vmem:[%s2654_s19] ss:$16 sps:$4 sm:$0xff]   ;;  %v2026_v17 = vld [vmem:[%s2654_s19 + $0x2c] ss:$16 sps:$4 sm:$0xff]  }
  0xad   : > { %497 = vmatprep.subr.bf16.mxu1 %v2012_v8  ;;  %v2023_v14 = vld [vmem:[%s2654_s19 + $0x24] ss:$16 sps:$4 sm:$0xff]   ;;  %v2021_v16 = vld [vmem:[%s2654_s19 + $0x20] ss:$16 sps:$4 sm:$0xff]   ;;  %v2024_v18 = vld [vmem:[%s2654_s19 + $0x28] ss:$16 sps:$4 sm:$0xff]  }
  0xae   : > { %v2029_v19 = vld [vmem:[%s2654_s19 + $0x44] ss:$16 sps:$4 sm:$0xff]   ;;  %v2032_v20 = vld [vmem:[%s2654_s19 + $0x4c] ss:$16 sps:$4 sm:$0xff]   ;;  %v2027_v21 = vld [vmem:[%s2654_s19 + $0x40] ss:$16 sps:$4 sm:$0xff]  }
  0xaf   : > { %457 = vmatpush1.bf16.msra.mxu0 %v2008_v4  ;;  %v2030_v22 = vld [vmem:[%s2654_s19 + $0x48] ss:$16 sps:$4 sm:$0xff]   ;;  %v2035_v23 = vld [vmem:[%s2654_s19 + $0x64] ss:$16 sps:$4 sm:$0xff]   ;;  %v2038_v24 = vld [vmem:[%s2654_s19 + $0x6c] ss:$16 sps:$4 sm:$0xff]  }
  0xb0   : > { %1463 = vmatprep.subr.bf16.mxu0 %v2017_v11  ;;  %498 = vmatpush1.bf16.msra.mxu1 %v2014_v10  ;;  %v2033_v25 = vld [vmem:[%s2654_s19 + $0x60] ss:$16 sps:$4 sm:$0xff]   ;;  %v2036_v26 = vld [vmem:[%s2654_s19 + $0x68] ss:$16 sps:$4 sm:$0xff]   ;;  %v2041_v27 = vld [vmem:[%s2654_s19 + $0x84] ss:$16 sps:$4 sm:$0xff]  }
  0xb1   : > { %1545 = vmatprep.subr.bf16.mxu1 %v2020_v13  ;;  %v2044_v28 = vld [vmem:[%s2654_s19 + $0x8c] ss:$16 sps:$4 sm:$0xff]   ;;  %v2039_v29 = vld [vmem:[%s2654_s19 + $0x80] ss:$16 sps:$4 sm:$0xff]   ;;  %v2042_v30 = vld [vmem:[%s2654_s19 + $0x88] ss:$16 sps:$4 sm:$0xff]   ;;  %v390_v13 = vlaneseq }
  0xb2   : > { %1778 = vmatmul.mubr.msk.bf16.vlgmr.msra.gmra.mrb[0].mxu0 %vm450_vm0, %v379_v9  ;;  %v2047_v31 = vld [vmem:[%s2654_s19 + $0xa4] ss:$16 sps:$4 sm:$0xff]   ;;  %v2050_v32 = vld [vmem:[%s2654_s19 + $0xac] ss:$16 sps:$4 sm:$0xff]   ;;  %v2045_v33 = vld [vmem:[%s2654_s19 + $0xa0] ss:$16 sps:$4 sm:$0xff]  }
  0xb3   : > { %1464 = vmatpush1.bf16.msra.mxu0 %v2015_v12  ;;  %1779 = vmatmul.mubr.msk.bf16.vlgmr.msra.gmra.mrb[0].mxu1 %vm450_vm0, %v379_v9  ;;  %v2048_v34 = vld [vmem:[%s2654_s19 + $0xa8] ss:$16 sps:$4 sm:$0xff]   ;;  %v2053_v35 = vld [vmem:[%s2654_s19 + $0xc4] ss:$16 sps:$4 sm:$0xff]   ;;  %v2056_v36 = vld [vmem:[%s2654_s19 + $0xcc] ss:$16 sps:$4 sm:$0xff]  }
  0xb4   : > { %1465 = vmatprep.subr.bf16.mxu0 %v2023_v14  ;;  %1546 = vmatpush1.bf16.msra.mxu1 %v2018_v15  ;;  %v2051_v37 = vld [vmem:[%s2654_s19 + $0xc0] ss:$16 sps:$4 sm:$0xff]   ;;  %v2054_v38 = vld [vmem:[%s2654_s19 + $0xc8] ss:$16 sps:$4 sm:$0xff]   ;;  %v2059_v39 = vld [vmem:[%s2654_s19 + $0xe4] ss:$16 sps:$4 sm:$0xff]  }
  0xb5   : > { %1547 = vmatprep.subr.bf16.mxu1 %v2026_v17  ;;  %v2062_v40 = vld [vmem:[%s2654_s19 + $0xec] ss:$16 sps:$4 sm:$0xff]   ;;  %v2057_v41 = vld [vmem:[%s2654_s19 + $0xe0] ss:$16 sps:$4 sm:$0xff]   ;;  %v2060_v42 = vld [vmem:[%s2654_s19 + $0xe8] ss:$16 sps:$4 sm:$0xff]  }
  0xb6   : > { %v2065_v43 = vld [vmem:[%s2654_s19 + $0x104] ss:$16 sps:$4 sm:$0xff]   ;;  %v2068_v44 = vld [vmem:[%s2654_s19 + $0x10c] ss:$16 sps:$4 sm:$0xff]   ;;  %v2063_v45 = vld [vmem:[%s2654_s19 + $0x100] ss:$16 sps:$4 sm:$0xff]  }
  0xb7   : > { %1466 = vmatpush1.bf16.msra.mxu0 %v2021_v16  ;;  %v2066_v46 = vld [vmem:[%s2654_s19 + $0x108] ss:$16 sps:$4 sm:$0xff]   ;;  %v2071_v47 = vld [vmem:[%s2654_s19 + $0x124] ss:$16 sps:$4 sm:$0xff]   ;;  %v2074_v48 = vld [vmem:[%s2654_s19 + $0x12c] ss:$16 sps:$4 sm:$0xff]  }
  0xb8   : > { %1548 = vmatpush1.bf16.msra.mxu1 %v2024_v18  ;;  %1467 = vmatprep.subr.bf16.mxu0 %v2029_v19  ;;  %v2069_v49 = vld [vmem:[%s2654_s19 + $0x120] ss:$16 sps:$4 sm:$0xff]   ;;  %v2072_v50 = vld [vmem:[%s2654_s19 + $0x128] ss:$16 sps:$4 sm:$0xff]   ;;  %v2077_v51 = vld [vmem:[%s2654_s19 + $0x144] ss:$16 sps:$4 sm:$0xff]  }
  0xb9   : > { %1549 = vmatprep.subr.bf16.mxu1 %v2032_v20  ;;  %v2080_v52 = vld [vmem:[%s2654_s19 + $0x14c] ss:$16 sps:$4 sm:$0xff]   ;;  %v2075_v53 = vld [vmem:[%s2654_s19 + $0x140] ss:$16 sps:$4 sm:$0xff]   ;;  %v2078_v54 = vld [vmem:[%s2654_s19 + $0x148] ss:$16 sps:$4 sm:$0xff]  }
  0xba   : > { %v2083_v55 = vld [vmem:[%s2654_s19 + $0x164] ss:$16 sps:$4 sm:$0xff]   ;;  %v2086_v56 = vld [vmem:[%s2654_s19 + $0x16c] ss:$16 sps:$4 sm:$0xff]   ;;  %v2081_v57 = vld [vmem:[%s2654_s19 + $0x160] ss:$16 sps:$4 sm:$0xff]  }
  0xbb   : > { %1468 = vmatpush1.bf16.msra.mxu0 %v2027_v21  ;;  %v2084_v58 = vld [vmem:[%s2654_s19 + $0x168] ss:$16 sps:$4 sm:$0xff]   ;;  %v2089_v59 = vld [vmem:[%s2654_s19 + $0x184] ss:$16 sps:$4 sm:$0xff]   ;;  %v2092_v60 = vld [vmem:[%s2654_s19 + $0x18c] ss:$16 sps:$4 sm:$0xff]  }
  0xbc   : > { %1550 = vmatpush1.bf16.msra.mxu1 %v2030_v22  ;;  %1469 = vmatprep.subr.bf16.mxu0 %v2035_v23  ;;  %v2087_v61 = vld [vmem:[%s2654_s19 + $0x180] ss:$16 sps:$4 sm:$0xff]   ;;  %v2090_v62 = vld [vmem:[%s2654_s19 + $0x188] ss:$16 sps:$4 sm:$0xff]   ;;  %v2095_v63 = vld [vmem:[%s2654_s19 + $0x1a4] ss:$16 sps:$4 sm:$0xff]  }
  0xbd   : > { %1551 = vmatprep.subr.bf16.mxu1 %v2038_v24  ;;  %v2098_v0 = vld [vmem:[%s2654_s19 + $0x1ac] ss:$16 sps:$4 sm:$0xff]   ;;  %v2093_v1 = vld [vmem:[%s2654_s19 + $0x1a0] ss:$16 sps:$4 sm:$0xff]   ;;  %v2096_v2 = vld [vmem:[%s2654_s19 + $0x1a8] ss:$16 sps:$4 sm:$0xff]  }
  0xbe   : > { %v2101_v3 = vld [vmem:[%s2654_s19 + $0x1c4] ss:$16 sps:$4 sm:$0xff]   ;;  %v2104_v4 = vld [vmem:[%s2654_s19 + $0x1cc] ss:$16 sps:$4 sm:$0xff]   ;;  %v2099_v5 = vld [vmem:[%s2654_s19 + $0x1c0] ss:$16 sps:$4 sm:$0xff]  }
  0xbf   : > { %1470 = vmatpush1.bf16.msra.mxu0 %v2033_v25  ;;  %v2102_v6 = vld [vmem:[%s2654_s19 + $0x1c8] ss:$16 sps:$4 sm:$0xff]   ;;  %v2105_v7 = vld [vmem:[%s2654_s19 + $0x1e0] ss:$16 sps:$4 sm:$0xff]   ;;  %v2107_v8 = vld [vmem:[%s2654_s19 + $0x1e4] ss:$16 sps:$4 sm:$0xff]  }
  0xc0   : > { %1552 = vmatpush1.bf16.msra.mxu1 %v2036_v26  ;;  %1471 = vmatprep.subr.bf16.mxu0 %v2041_v27  ;;  %v2108_v9 = vld [vmem:[%s2654_s19 + $0x1e8] ss:$16 sps:$4 sm:$0xff]   ;;  %v2110_v10 = vld [vmem:[%s2654_s19 + $0x1ec] ss:$16 sps:$4 sm:$0xff]   ;;  %v2113_v11 = vld [vmem:[%s2654_s19 + $0x204] ss:$16 sps:$4 sm:$0xff]  }
  0xc1   : > { %1553 = vmatprep.subr.bf16.mxu1 %v2044_v28  ;;  %v2116_v12 = vld [vmem:[%s2654_s19 + $0x20c] ss:$16 sps:$4 sm:$0xff]   ;;  %v391_v14 = vshrl.u32 %v390_v13, 7  ;;  %v388_v16 = vld [vmem:[#allocation4] sm:$0xf]  ;;  %s1768_s9 = sshll.u32 %s2471_s28, 2 }
  0xc2   : > { %s1767_s22 = sshll.u32 %s322_s8, 2  ;;  %p372_p2 = scmp.lt.s32.totalorder %s1768_s9, 7 }
  0xc3   : > { %1472 = vmatpush1.bf16.msra.mxu0 %v2039_v29  ;;  %v2729_v15 = vsub.s32 0, %v391_v14  ;;  %v2731_v17 = vsub.s32 1, %v391_v14  ;;  %v2733_v18 = vsub.s32 2, %v391_v14  ;;  %v2736_v20 = vsub.s32 3, %v391_v14  ;;  %s333_s7 = scalar_lea.vmem [#allocation9], %s1767_s22  ;;  %s2883_s27 = sld [smem:[#allocation17_spill]] }
  0xc4   : > { %1554 = vmatpush1.bf16.msra.mxu1 %v2042_v30  ;;  %1473 = vmatprep.subr.bf16.mxu0 %v2047_v31  ;;  %s2890_s9 = smov (!%p372_p2, %s1768_s9), 7 }
  0xc5   : > { %1555 = vmatprep.subr.bf16.mxu1 %v2050_v32  ;;  %v393_v19 = vrot.slane %v388_v16, %v2729_v15  ;;  %v397_v21 = vrot.slane %v388_v16, %v2731_v17  ;;  %v401_v23 = vrot.slane %v388_v16, %v2733_v18  ;;  %v405_v26 = vrot.slane %v388_v16, %v2736_v20  ;;  %s1769_s30 = sshll.u32 %s2890_s9, 3 }
  0xc7   : > { %1474 = vmatpush1.bf16.msra.mxu0 %v2045_v33 }
  0xc8   : > { %1556 = vmatpush1.bf16.msra.mxu1 %v2048_v34  ;;  %1475 = vmatprep.subr.bf16.mxu0 %v2053_v35 }
  0xc9   : > { %1557 = vmatprep.subr.bf16.mxu1 %v2056_v36  ;;  %s375_s13 = scalar_lea.vmem %s2883_s27, %s1769_s30 }
  0xcb   : > { %1476 = vmatpush1.bf16.msra.mxu0 %v2051_v37 }
  0xcc   : > { %1558 = vmatpush1.bf16.msra.mxu1 %v2054_v38  ;;  %1477 = vmatprep.subr.bf16.mxu0 %v2059_v39 }
  0xcd   : > { %1559 = vmatprep.subr.bf16.mxu1 %v2062_v40 }
  0xcf   : > { %1478 = vmatpush1.bf16.msra.mxu0 %v2057_v41 }
  0xd0   : > { %1560 = vmatpush1.bf16.msra.mxu1 %v2060_v42  ;;  %1479 = vmatprep.subr.bf16.mxu0 %v2065_v43 }
  0xd1   : > { %1561 = vmatprep.subr.bf16.mxu1 %v2068_v44 }
  0xd3   : > { %1480 = vmatpush1.bf16.msra.mxu0 %v2063_v45 }
  0xd4   : > { %1562 = vmatpush1.bf16.msra.mxu1 %v2066_v46  ;;  %1481 = vmatprep.subr.bf16.mxu0 %v2071_v47 }
  0xd5   : > { %1563 = vmatprep.subr.bf16.mxu1 %v2074_v48 }
  0xd7   : > { %1482 = vmatpush1.bf16.msra.mxu0 %v2069_v49 }
  0xd8   : > { %1564 = vmatpush1.bf16.msra.mxu1 %v2072_v50  ;;  %1483 = vmatprep.subr.bf16.mxu0 %v2077_v51 }
  0xd9   : > { %1565 = vmatprep.subr.bf16.mxu1 %v2080_v52 }
  0xdb   : > { %1484 = vmatpush1.bf16.msra.mxu0 %v2075_v53 }
  0xdc   : > { %1566 = vmatpush1.bf16.msra.mxu1 %v2078_v54  ;;  %1485 = vmatprep.subr.bf16.mxu0 %v2083_v55 }
  0xdd   : > { %1567 = vmatprep.subr.bf16.mxu1 %v2086_v56 }
  0xdf   : > { %1486 = vmatpush1.bf16.msra.mxu0 %v2081_v57 }
  0xe0   : > { %1568 = vmatpush1.bf16.msra.mxu1 %v2084_v58  ;;  %1487 = vmatprep.subr.bf16.mxu0 %v2089_v59 }
  0xe1   : > { %1569 = vmatprep.subr.bf16.mxu1 %v2092_v60 }
  0xe3   : > { %1488 = vmatpush1.bf16.msra.mxu0 %v2087_v61 }
  0xe4   : > { %1570 = vmatpush1.bf16.msra.mxu1 %v2090_v62  ;;  %1489 = vmatprep.subr.bf16.mxu0 %v2095_v63 }
  0xe5   : > { %1571 = vmatprep.subr.bf16.mxu1 %v2098_v0 }
  0xe7   : > { %1490 = vmatpush1.bf16.msra.mxu0 %v2093_v1 }
  0xe8   : > { %1572 = vmatpush1.bf16.msra.mxu1 %v2096_v2  ;;  %1491 = vmatprep.subr.bf16.mxu0 %v2101_v3 }
  0xe9   : > { %1573 = vmatprep.subr.bf16.mxu1 %v2104_v4 }
  0xeb   : > { %1492 = vmatpush1.bf16.msra.mxu0 %v2099_v5 }
  0xec   : > { %1574 = vmatpush1.bf16.msra.mxu1 %v2102_v6  ;;  %1493 = vmatprep.subr.bf16.mxu0 %v2107_v8 }
  0xed   : > { %1575 = vmatprep.subr.bf16.mxu1 %v2110_v10 }
  0xef   : > { %1494 = vmatpush1.bf16.msra.mxu0 %v2105_v7 }
  0xf0   : > { %1576 = vmatpush1.bf16.msra.mxu1 %v2108_v9  ;;  %1504 = vmatprep.subr.bf16.mxu0 %v2113_v11 }
  0xf1   : > { %1586 = vmatprep.subr.bf16.mxu1 %v2116_v12 }
 0x185   : > { %v488_v22 = vpop.f32.mrb[0].mxu0 }
 0x186   : > { %v489_v24 = vadd.f32 %v488_v22, %v393_v19  ;;  %v490_v25 = vpop.f32.mrb[1].mxu0  ;;  %v529_v31 = vpop.f32.mrb[0].mxu1 }
 0x187   : > { %v491_v27 = vadd.f32 %v490_v25, %v397_v21  ;;  %v492_v28 = vpop.f32.mrb[2].mxu0  ;;  %v530_v33 = vadd.f32 %v529_v31, %v401_v23  ;;  %v531_v34 = vpop.f32.mrb[1].mxu1 }
 0x188   : > { %v536_v29 = vrot.slane %v489_v24, 4  ;;  %v493_v30 = vpop.f32.mrb[3].mxu0  ;;  %v532_v36 = vadd.f32 %v531_v34, %v405_v26  ;;  %v533_v37 = vpop.f32.mrb[2].mxu1 }
 0x189   : > { %v542_v32 = vrot.slane %v491_v27, 4  ;;  %v548_v39 = vrot.slane %v530_v33, 4  ;;  %v534_v40 = vpop.f32.mrb[3].mxu1 }
 0x18a   : > { %v537_v35 = vadd.f32 %v536_v29, %v489_v24  ;;  %v554_v42 = vrot.slane %v532_v36, 4 }
 0x18b   : > { %v543_v38 = vadd.f32 %v542_v32, %v491_v27  ;;  %v549_v44 = vadd.f32 %v548_v39, %v530_v33 }
 0x18c   : > { %v538_v41 = vrot.slane %v537_v35, 2  ;;  %v555_v46 = vadd.f32 %v554_v42, %v532_v36 }
 0x18d   : > { %v544_v43 = vrot.slane %v543_v38, 2  ;;  %v550_v48 = vrot.slane %v549_v44, 2 }
 0x18e   : > { %v539_v45 = vadd.f32 %v538_v41, %v537_v35  ;;  %v556_v50 = vrot.slane %v555_v46, 2 }
 0x18f   : > { %v545_v47 = vadd.f32 %v544_v43, %v543_v38  ;;  %v551_v52 = vadd.f32 %v550_v48, %v549_v44  ;;  %v613_v44 = vld [vmem:[%s2843_s3] sm:$0xf] }
 0x190   : > { %v540_v49 = vrot.slane %v539_v45, 1  ;;  %v557_v54 = vadd.f32 %v556_v50, %v555_v46  ;;  %v618_v46 = vrot.slane %v613_v44, %v2729_v15  ;;  %v622_v48 = vrot.slane %v613_v44, %v2731_v17 }
 0x191   : > { %v546_v51 = vrot.slane %v545_v47, 1  ;;  %v552_v56 = vrot.slane %v551_v52, 1 }
 0x192   : > { %v541_v53 = vadd.f32 %v540_v49, %v539_v45  ;;  %v558_v58 = vrot.slane %v557_v54, 1  ;;  %v639_v45 = vld [vmem:[#allocation6] sm:$0xf] }
 0x193   : > { %v547_v55 = vadd.f32 %v546_v51, %v545_v47  ;;  %v553_v60 = vadd.f32 %v552_v56, %v551_v52  ;;  %v644_v51 = vrot.slane %v639_v45, %v2729_v15 }
 0x194   : > { %v561_v57 = vmul.f32 0.125, %v541_v53  ;;  %v559_v62 = vadd.f32 %v558_v58, %v557_v54  ;;  %v626_v53 = vrot.slane %v613_v44, %v2733_v18  ;;  %v648_v54 = vrot.slane %v639_v45, %v2731_v17 }
 0x195   : > { %v562_v59 = vmul.f32 0.125, %v547_v55  ;;  %v563_v0 = vmul.f32 0.125, %v553_v60 }
 0x196   : > { %v565_v61 = vsub.f32 %v489_v24, %v561_v57  ;;  %v564_v2 = vmul.f32 0.125, %v559_v62  ;;  %v630_v57 = vrot.slane %v613_v44, %v2736_v20  ;;  %v652_v62 = vrot.slane %v639_v45, %v2733_v18  ;;  %v2153_v44 = vld [vmem:[%s2654_s19 + $0x2e0] ss:$16 sps:$4 sm:$0xff]  }
 0x197   : > { %v566_v63 = vsub.f32 %v491_v27, %v562_v59  ;;  %v567_v4 = vsub.f32 %v530_v33, %v563_v0 }
 0x198   : > { %v569_v1 = vmul.f32 %v565_v61, %v565_v61  ;;  %v568_v6 = vsub.f32 %v532_v36, %v564_v2 }
 0x199   : > { %v570_v3 = vmul.f32 %v566_v63, %v566_v63  ;;  %v571_v8 = vmul.f32 %v567_v4, %v567_v4 }
 0x19a   : > { %v573_v5 = vrot.slane %v569_v1, 4  ;;  %v572_v10 = vmul.f32 %v568_v6, %v568_v6 }
 0x19b   : > { %v579_v7 = vrot.slane %v570_v3, 4  ;;  %v585_v12 = vrot.slane %v571_v8, 4 }
 0x19c   : > { %v574_v9 = vadd.f32 %v573_v5, %v569_v1  ;;  %v591_v14 = vrot.slane %v572_v10, 4 }
 0x19d   : > { %v580_v11 = vadd.f32 %v579_v7, %v570_v3  ;;  %v586_v19 = vadd.f32 %v585_v12, %v571_v8 }
 0x19e   : > { %v575_v13 = vrot.slane %v574_v9, 2  ;;  %v592_v22 = vadd.f32 %v591_v14, %v572_v10  ;;  %v2111_v10 = vld [vmem:[%s2654_s19 + $0x200] ss:$16 sps:$4 sm:$0xff]  }
 0x19f   : > { %v581_v16 = vrot.slane %v580_v11, 2  ;;  %v587_v24 = vrot.slane %v586_v19, 2 }
 0x1a0   : > { %v576_v21 = vadd.f32 %v575_v13, %v574_v9  ;;  %v593_v26 = vrot.slane %v592_v22, 2  ;;  %v2122_v13 = vld [vmem:[%s2654_s19 + $0x22c] ss:$16 sps:$4 sm:$0xff]  }
 0x1a1   : > { %v582_v23 = vadd.f32 %v581_v16, %v580_v11  ;;  %v588_v28 = vadd.f32 %v587_v24, %v586_v19  ;;  %v2114_v11 = vld [vmem:[%s2654_s19 + $0x208] ss:$16 sps:$4 sm:$0xff]   ;;  %v2117_v19 = vld [vmem:[%s2654_s19 + $0x220] ss:$16 sps:$4 sm:$0xff]  }
 0x1a2   : > { %v577_v25 = vrot.slane %v576_v21, 1  ;;  %v594_v30 = vadd.f32 %v593_v26, %v592_v22  ;;  %v2125_v22 = vld [vmem:[%s2654_s19 + $0x244] ss:$16 sps:$4 sm:$0xff]   ;;  %v2123_v24 = vld [vmem:[%s2654_s19 + $0x240] ss:$16 sps:$4 sm:$0xff]  }
 0x1a3   : > { %v583_v27 = vrot.slane %v582_v23, 1  ;;  %v589_v32 = vrot.slane %v588_v28, 1  ;;  %v2131_v26 = vld [vmem:[%s2654_s19 + $0x264] ss:$16 sps:$4 sm:$0xff]  }
 0x1a4   : > { %v578_v29 = vadd.f32 %v577_v25, %v576_v21  ;;  %v595_v34 = vrot.slane %v594_v30, 1  ;;  %v2120_v21 = vld [vmem:[%s2654_s19 + $0x228] ss:$16 sps:$4 sm:$0xff]  }
 0x1a5   : > { %v584_v31 = vadd.f32 %v583_v27, %v582_v23  ;;  %v590_v36 = vadd.f32 %v589_v32, %v588_v28  ;;  %v2128_v23 = vld [vmem:[%s2654_s19 + $0x24c] ss:$16 sps:$4 sm:$0xff]   ;;  %v2126_v25 = vld [vmem:[%s2654_s19 + $0x248] ss:$16 sps:$4 sm:$0xff]   ;;  %v2129_v28 = vld [vmem:[%s2654_s19 + $0x260] ss:$16 sps:$4 sm:$0xff]  }
 0x1a6   : > { %v597_v33 = vmul.f32 0.125, %v578_v29  ;;  %v596_v38 = vadd.f32 %v595_v34, %v594_v30  ;;  %v2134_v27 = vld [vmem:[%s2654_s19 + $0x26c] ss:$16 sps:$4 sm:$0xff]   ;;  %v2132_v29 = vld [vmem:[%s2654_s19 + $0x268] ss:$16 sps:$4 sm:$0xff]  }
 0x1a7   : > { %v598_v35 = vmul.f32 0.125, %v584_v31  ;;  %v599_v40 = vmul.f32 0.125, %v590_v36  ;;  %v2137_v30 = vld [vmem:[%s2654_s19 + $0x284] ss:$16 sps:$4 sm:$0xff]   ;;  %v2140_v31 = vld [vmem:[%s2654_s19 + $0x28c] ss:$16 sps:$4 sm:$0xff]  }
 0x1a8   : > { %v601_v37 = vadd.f32 1e-05, %v597_v33  ;;  %v600_v41 = vmul.f32 0.125, %v596_v38  ;;  %v2135_v32 = vld [vmem:[%s2654_s19 + $0x280] ss:$16 sps:$4 sm:$0xff]  }
 0x1a9   : > { %v602_v39 = vadd.f32 1e-05, %v598_v35  ;;  %v603_v42 = vadd.f32 1e-05, %v599_v40  ;;  %v2138_v33 = vld [vmem:[%s2654_s19 + $0x288] ss:$16 sps:$4 sm:$0xff]  }
 0x1aa   : > { %2207 = vrsqrt.f32 %v601_v37  ;;  %v604_v43 = vadd.f32 1e-05, %v600_v41  ;;  %v2143_v34 = vld [vmem:[%s2654_s19 + $0x2a4] ss:$16 sps:$4 sm:$0xff]   ;;  %v2146_v35 = vld [vmem:[%s2654_s19 + $0x2ac] ss:$16 sps:$4 sm:$0xff]  }
 0x1ab   : > { %2209 = vrsqrt.f32 %v602_v39  ;;  %v2141_v36 = vld [vmem:[%s2654_s19 + $0x2a0] ss:$16 sps:$4 sm:$0xff]   ;;  %v2144_v37 = vld [vmem:[%s2654_s19 + $0x2a8] ss:$16 sps:$4 sm:$0xff]   ;;  %v2149_v38 = vld [vmem:[%s2654_s19 + $0x2c4] ss:$16 sps:$4 sm:$0xff]  }
 0x1ac   : > { %2211 = vrsqrt.f32 %v603_v42  ;;  %v2152_v39 = vld [vmem:[%s2654_s19 + $0x2cc] ss:$16 sps:$4 sm:$0xff]   ;;  %v2147_v40 = vld [vmem:[%s2654_s19 + $0x2c0] ss:$16 sps:$4 sm:$0xff]   ;;  %v2150_v41 = vld [vmem:[%s2654_s19 + $0x2c8] ss:$16 sps:$4 sm:$0xff]  }
 0x1ad   : > { %2213 = vrsqrt.f32 %v604_v43  ;;  %v2155_v42 = vld [vmem:[%s2654_s19 + $0x2e4] ss:$16 sps:$4 sm:$0xff]   ;;  %v2158_v43 = vld [vmem:[%s2654_s19 + $0x2ec] ss:$16 sps:$4 sm:$0xff]  }
 0x1b4   : > { %v2208_v47 = vpop.eup %2207 }
 0x1b5   : > { %v2210_v49 = vpop.eup %2209  ;;  %v609_v50 = vmul.f32 %v2208_v47, %v565_v61  ;;  %v2164_v47 = vld [vmem:[%s2654_s19 + $0x30c] ss:$16 sps:$4 sm:$0xff]  }
 0x1b6   : > { %v610_v52 = vmul.f32 %v2210_v49, %v566_v63  ;;  %v2212_v55 = vpop.eup %2211  ;;  %v656_v63 = vrot.slane %v639_v45, %v2736_v20  ;;  %v2156_v45 = vld [vmem:[%s2654_s19 + $0x2e8] ss:$16 sps:$4 sm:$0xff]  }
 0x1b7   : > { %v635_v56 = vmul.f32 %v618_v46, %v609_v50  ;;  %v2214_v58 = vpop.eup %2213  ;;  %v611_v59 = vmul.f32 %v2212_v55, %v567_v4  ;;  %v2161_v46 = vld [vmem:[%s2654_s19 + $0x304] ss:$16 sps:$4 sm:$0xff]   ;;  %v2162_v49 = vld [vmem:[%s2654_s19 + $0x308] ss:$16 sps:$4 sm:$0xff]   ;;  %v2176_v55 = vld [vmem:[%s2654_s19 + $0x34c] ss:$16 sps:$4 sm:$0xff]  }
 0x1b8   : > { %v636_v60 = vmul.f32 %v622_v48, %v610_v52  ;;  %v612_v61 = vmul.f32 %v2214_v58, %v568_v6  ;;  %v2119_v6 = vld [vmem:[%s2654_s19 + $0x224] ss:$16 sps:$4 sm:$0xff]   ;;  %v2159_v48 = vld [vmem:[%s2654_s19 + $0x300] ss:$16 sps:$4 sm:$0xff]  }
 0x1b9   : > { %v661_v0 = vadd.f32 %v644_v51, %v635_v56  ;;  %v637_v1 = vmul.f32 %v626_v53, %v611_v59  ;;  %v2167_v50 = vld [vmem:[%s2654_s19 + $0x324] ss:$16 sps:$4 sm:$0xff]   ;;  %v2170_v51 = vld [vmem:[%s2654_s19 + $0x32c] ss:$16 sps:$4 sm:$0xff]   ;;  %v2165_v52 = vld [vmem:[%s2654_s19 + $0x320] ss:$16 sps:$4 sm:$0xff]  }
 0x1ba   : > { %v662_v2 = vadd.f32 %v648_v54, %v636_v60  ;;  %v638_v5 = vmul.f32 %v630_v57, %v612_v61  ;;  %v2168_v53 = vld [vmem:[%s2654_s19 + $0x328] ss:$16 sps:$4 sm:$0xff]   ;;  %v2173_v54 = vld [vmem:[%s2654_s19 + $0x344] ss:$16 sps:$4 sm:$0xff]   ;;  %v2171_v56 = vld [vmem:[%s2654_s19 + $0x340] ss:$16 sps:$4 sm:$0xff]  }
 0x1bb   : > { %v665_v3 = vmax.f32 %v661_v0, 0.0  ;;  %v2752_v8 = vadd.f32 %v652_v62, %v637_v1  ;;  %v2174_v57 = vld [vmem:[%s2654_s19 + $0x348] ss:$16 sps:$4 sm:$0xff]   ;;  %v2179_v58 = vld [vmem:[%s2654_s19 + $0x364] ss:$16 sps:$4 sm:$0xff]  }
 0x1bc   : > { %v666_v7 = vmax.f32 %v662_v2, 0.0  ;;  %v664_v9 = vadd.f32 %v656_v63, %v638_v5  ;;  %v2182_v59 = vld [vmem:[%s2654_s19 + $0x36c] ss:$16 sps:$4 sm:$0xff]   ;;  %v2177_v60 = vld [vmem:[%s2654_s19 + $0x360] ss:$16 sps:$4 sm:$0xff]  }
 0x1bd   : > { %v669_v12 = vpack.c.bf16 %v665_v3, %v665_v3  ;;  %v2180_v62 = vld [vmem:[%s2654_s19 + $0x368] ss:$16 sps:$4 sm:$0xff]   ;;  %v2185_v61 = vld [vmem:[%s2654_s19 + $0x384] ss:$16 sps:$4 sm:$0xff]   ;;  %v2188_v0 = vld [vmem:[%s2654_s19 + $0x38c] ss:$16 sps:$4 sm:$0xff]  }
 0x1be   : > { %v670_v4 = vpack.c.bf16 %v666_v7, %v666_v7  ;;  %v668_v14 = vmax.f32 %v664_v9, 0.0  ;;  %v2183_v63 = vld [vmem:[%s2654_s19 + $0x380] ss:$16 sps:$4 sm:$0xff]   ;;  %v2186_v1 = vld [vmem:[%s2654_s19 + $0x388] ss:$16 sps:$4 sm:$0xff]  }
 0x1bf   : > { %v2191_v2 = vld [vmem:[%s2654_s19 + $0x3a4] ss:$16 sps:$4 sm:$0xff]   ;;  %v2194_v3 = vld [vmem:[%s2654_s19 + $0x3ac] ss:$16 sps:$4 sm:$0xff]   ;;  %v2189_v5 = vld [vmem:[%s2654_s19 + $0x3a0] ss:$16 sps:$4 sm:$0xff]  }
 0x1c0   : > { %1495 = vmatprep.mubr.bf16.mxu0 %v670_v4  ;;  %1577 = vmatprep.mubr.bf16.mxu1 %v670_v4  ;;  %v672_v16 = vpack.c.bf16 %v668_v14, %v668_v14  ;;  %v2192_v7 = vld [vmem:[%s2654_s19 + $0x3a8] ss:$16 sps:$4 sm:$0xff]   ;;  %v2197_v9 = vld [vmem:[%s2654_s19 + $0x3c4] ss:$16 sps:$4 sm:$0xff]   ;;  %v2200_v4 = vld [vmem:[%s2654_s19 + $0x3cc] ss:$16 sps:$4 sm:$0xff]  }
 0x1c1   : > { %1496 = vmatmul.mubr.bf16.vlgmr.msra.gmra.mrb[4].mxu0 %v669_v12  ;;  %1578 = vmatmul.mubr.bf16.vlgmr.msra.gmra.mrb[4].mxu1 %v669_v12  ;;  %v2203_v12 = vld [vmem:[%s2654_s19 + $0x3e4] ss:$16 sps:$4 sm:$0xff]   ;;  %v2204_v14 = vld [vmem:[%s2654_s19 + $0x3e8] ss:$16 sps:$4 sm:$0xff]  }
 0x1c2   : > { %1505 = vmatpush1.bf16.msra.mxu0 %v2111_v10  ;;  %1587 = vmatpush1.bf16.msra.mxu1 %v2114_v11  ;;  %v2195_v10 = vld [vmem:[%s2654_s19 + $0x3c0] ss:$16 sps:$4 sm:$0xff]   ;;  %v2198_v11 = vld [vmem:[%s2654_s19 + $0x3c8] ss:$16 sps:$4 sm:$0xff]  }
 0x1c3   : > { %1506 = vmatprep.subr.bf16.mxu0 %v2119_v6  ;;  %1588 = vmatprep.subr.bf16.mxu1 %v2122_v13  ;;  %v2206_v6 = vld [vmem:[%s2654_s19 + $0x3ec] ss:$16 sps:$4 sm:$0xff]   ;;  %v2201_v13 = vld [vmem:[%s2654_s19 + $0x3e0] ss:$16 sps:$4 sm:$0xff]  }
 0x1c4   : > { %1536 = vmatprep.mubr.bf16.mxu0 %v672_v16  ;;  %1618 = vmatprep.mubr.bf16.mxu1 %v672_v16  ;;  %v667_v16 = vmax.f32 %v2752_v8, 0.0 }
 0x1c6   : > { %1507 = vmatpush1.bf16.msra.mxu0 %v2117_v19  ;;  %1589 = vmatpush1.bf16.msra.mxu1 %v2120_v21  ;;  %v671_v19 = vpack.c.bf16 %v667_v16, %v667_v16  ;;  %v801_v21 = vld [vmem:[%s333_s7] sm:$0xf] }
 0x1c7   : > { %1508 = vmatprep.subr.bf16.mxu0 %v2125_v22  ;;  %1590 = vmatprep.subr.bf16.mxu1 %v2128_v23  ;;  %v806_v22 = vrot.slane %v801_v21, %v2729_v15  ;;  %v810_v23 = vrot.slane %v801_v21, %v2731_v17 }
 0x1ca   : > { %1509 = vmatpush1.bf16.msra.mxu0 %v2123_v24  ;;  %1591 = vmatpush1.bf16.msra.mxu1 %v2126_v25  ;;  %v814_v24 = vrot.slane %v801_v21, %v2733_v18 }
 0x1cb   : > { %1510 = vmatprep.subr.bf16.mxu0 %v2131_v26  ;;  %1592 = vmatprep.subr.bf16.mxu1 %v2134_v27  ;;  %v818_v26 = vrot.slane %v801_v21, %v2736_v20 }
 0x1ce   : > { %1511 = vmatpush1.bf16.msra.mxu0 %v2129_v28  ;;  %1593 = vmatpush1.bf16.msra.mxu1 %v2132_v29 }
 0x1cf   : > { %1512 = vmatprep.subr.bf16.mxu0 %v2137_v30  ;;  %1594 = vmatprep.subr.bf16.mxu1 %v2140_v31 }
 0x1d2   : > { %1513 = vmatpush1.bf16.msra.mxu0 %v2135_v32  ;;  %1595 = vmatpush1.bf16.msra.mxu1 %v2138_v33 }
 0x1d3   : > { %1514 = vmatprep.subr.bf16.mxu0 %v2143_v34  ;;  %1596 = vmatprep.subr.bf16.mxu1 %v2146_v35 }
 0x1d6   : > { %1515 = vmatpush1.bf16.msra.mxu0 %v2141_v36  ;;  %1597 = vmatpush1.bf16.msra.mxu1 %v2144_v37 }
 0x1d7   : > { %1516 = vmatprep.subr.bf16.mxu0 %v2149_v38  ;;  %1598 = vmatprep.subr.bf16.mxu1 %v2152_v39 }
 0x1da   : > { %1517 = vmatpush1.bf16.msra.mxu0 %v2147_v40  ;;  %1599 = vmatpush1.bf16.msra.mxu1 %v2150_v41 }
 0x1db   : > { %1518 = vmatprep.subr.bf16.mxu0 %v2155_v42  ;;  %1600 = vmatprep.subr.bf16.mxu1 %v2158_v43 }
 0x1de   : > { %1519 = vmatpush1.bf16.msra.mxu0 %v2153_v44  ;;  %1601 = vmatpush1.bf16.msra.mxu1 %v2156_v45 }
 0x1df   : > { %1520 = vmatprep.subr.bf16.mxu0 %v2161_v46  ;;  %1602 = vmatprep.subr.bf16.mxu1 %v2164_v47 }
 0x1e2   : > { %1521 = vmatpush1.bf16.msra.mxu0 %v2159_v48  ;;  %1603 = vmatpush1.bf16.msra.mxu1 %v2162_v49 }
 0x1e3   : > { %1522 = vmatprep.subr.bf16.mxu0 %v2167_v50  ;;  %1604 = vmatprep.subr.bf16.mxu1 %v2170_v51 }
 0x1e6   : > { %1523 = vmatpush1.bf16.msra.mxu0 %v2165_v52  ;;  %1605 = vmatpush1.bf16.msra.mxu1 %v2168_v53 }
 0x1e7   : > { %1524 = vmatprep.subr.bf16.mxu0 %v2173_v54  ;;  %1606 = vmatprep.subr.bf16.mxu1 %v2176_v55 }
 0x1ea   : > { %1525 = vmatpush1.bf16.msra.mxu0 %v2171_v56  ;;  %1607 = vmatpush1.bf16.msra.mxu1 %v2174_v57 }
 0x1eb   : > { %1526 = vmatprep.subr.bf16.mxu0 %v2179_v58  ;;  %1608 = vmatprep.subr.bf16.mxu1 %v2182_v59 }
 0x1ee   : > { %1527 = vmatpush1.bf16.msra.mxu0 %v2177_v60  ;;  %1609 = vmatpush1.bf16.msra.mxu1 %v2180_v62 }
 0x1ef   : > { %1528 = vmatprep.subr.bf16.mxu0 %v2185_v61  ;;  %1610 = vmatprep.subr.bf16.mxu1 %v2188_v0 }
 0x1f2   : > { %1529 = vmatpush1.bf16.msra.mxu0 %v2183_v63  ;;  %1611 = vmatpush1.bf16.msra.mxu1 %v2186_v1 }
 0x1f3   : > { %1530 = vmatprep.subr.bf16.mxu0 %v2191_v2  ;;  %1612 = vmatprep.subr.bf16.mxu1 %v2194_v3 }
 0x1f6   : > { %1531 = vmatpush1.bf16.msra.mxu0 %v2189_v5  ;;  %1613 = vmatpush1.bf16.msra.mxu1 %v2192_v7 }
 0x1f7   : > { %1532 = vmatprep.subr.bf16.mxu0 %v2197_v9  ;;  %1614 = vmatprep.subr.bf16.mxu1 %v2200_v4 }
 0x1fa   : > { %1533 = vmatpush1.bf16.msra.mxu0 %v2195_v10  ;;  %1615 = vmatpush1.bf16.msra.mxu1 %v2198_v11 }
 0x1fb   : > { %1534 = vmatprep.subr.bf16.mxu0 %v2203_v12  ;;  %1616 = vmatprep.subr.bf16.mxu1 %v2206_v6 }
 0x1fe   : > { %1535 = vmatpush1.bf16.msra.mxu0 %v2201_v13  ;;  %1617 = vmatpush1.bf16.msra.mxu1 %v2204_v14 }
 0x201   : > { %1537 = vmatmul.mubr.bf16.vlgmr.msra.gmra.mrb[4].mxu0 %v671_v19  ;;  %1619 = vmatmul.mubr.bf16.vlgmr.msra.gmra.mrb[4].mxu1 %v671_v19 }
 0x2d4   : > { %v1538_v8 = vpop.f32.mrb[4].mxu0  ;;  %v1620_v25 = vpop.f32.mrb[4].mxu1 }
 0x2d5   : > { %v1912_v27 = vadd.f32 %v1538_v8, %v806_v22  ;;  %v1540_v28 = vpop.f32.mrb[5].mxu0  ;;  %v1622_v29 = vpop.f32.mrb[5].mxu1  ;;  %v1914_v15 = vadd.f32 %v1620_v25, %v814_v24 }
 0x2d6   : > { %v1913_v30 = vadd.f32 %v1540_v28, %v810_v23  ;;  %v1542_v31 = vpop.f32.mrb[6].mxu0  ;;  %v1624_v32 = vpop.f32.mrb[6].mxu1  ;;  %v1915_v18 = vadd.f32 %v1622_v29, %v818_v26 }
 0x2d7   : > { %1627 = vst [vmem:[%s375_s13] sm:$0xff] %v1912_v27  ;;  %v1543_v33 = vpop.f32.mrb[7].mxu0  ;;  %v1625_v17 = vpop.f32.mrb[7].mxu1  ;;  %1629 = vst [vmem:[%s375_s13 + $0x10] sm:$0xff] %v1914_v15 }
 0x2d8   : > { %1628 = vst [vmem:[%s375_s13 + $0x8] sm:$0xff] %v1913_v30  ;;  %1630 = vst [vmem:[%s375_s13 + $0x18] sm:$0xff] %v1915_v18 }
 0x2d9 PF: > { %s2884_s27 = sld [smem:[#allocation13_spill]]  ;;  %s2885_s28 = sld [smem:[#allocation14_spill]] }
 0x2da   : > { %s2886_s24 = smov %s2393_s25  ;;  %s2887_s25 = smov %s2397_s26 }
 0x2df   : > { %p19_p3 = scmp.ge.s32.totalorder %s2884_s27, 4   ;;  %s2888_s26 = smov %s2885_s28 }
 0x2e1   :  { %21 = sbr.rel (!%p19_p3) target bundleno = 9 (0x9), region = 112 }
 0x2e8   :  { %1653 = vsyncpa [#allocation3], 1 }
 0x2e9   :  { %1655 = vsyncpa [#allocation3 + $0x1], 1 }
 0x2ea   :  { %1656 = vsyncpa [#allocation5], 1 }
 0x2eb   :  { %1657 = vsyncpa [#allocation8], 1 }
 0x2ec   :  { %1659 = vsyncpa [#allocation8 + $0x1], 1 }

</bundles_post_ra>
